<compile_context>
chip_gen: v7x
topology: tpu7x:2x2x1
jax: 0.10.0
libtpu: 0.0.40
codegen_flags: <defaults>
</compile_context>

<pallas_src>
import functools

import jax
import jax.numpy as jnp
from jax.experimental import pallas as pl
from jax.experimental.pallas import tpu as pltpu

D_IN, D_H1, D_H2 = 132, 64, 32


def _classifier_kernel(x_ref, w1_ref, b1_ref, w2_ref, b2_ref, w3t_ref, b3_ref,
                       out_ref, *, sub, num_sub, k):
    def body(c, carry):
        r = pl.multiple_of(c * sub, sub)
        xc = x_ref[pl.ds(r, sub), :]                               # (sub, 132) f32

        # Weights are re-read per sub-chunk (cheap VMEM loads, short live ranges).
        # fc1 / fc2 on the MXU: bf16 operands, f32 accumulation.
        h1 = jnp.dot(xc.astype(jnp.bfloat16), w1_ref[...],
                     preferred_element_type=jnp.float32) + b1_ref[...]
        h1 = jnp.maximum(h1, 0.0)                                  # (sub, 64) f32

        h2 = jnp.dot(h1.astype(jnp.bfloat16), w2_ref[...],
                     preferred_element_type=jnp.float32) + b2_ref[...]
        h2 = jnp.maximum(h2, 0.0)                                  # (sub, 32) f32

        # fc3 + argmax on the VPU/XLU (k is tiny, N-dim MXU pushes are wasted).
        # Strict ">" scan over j = 0..k-1 keeps the first-occurrence tie-break
        # of torch.argmax.  All math here is f32 (w3/b3 are not cast to bf16).
        w3t = w3t_ref[...]                                         # (k, 32)  f32
        b3 = b3_ref[...]                                           # (1, k)   f32

        best_val = (jnp.sum(h2 * w3t[0:1, :], axis=-1, keepdims=True)
                    + b3[:, 0:1])                                  # (sub, 1)
        best_idx = jnp.zeros_like(best_val)                        # (sub, 1) f32
        for j in range(1, k):
            lj = (jnp.sum(h2 * w3t[j:j + 1, :], axis=-1, keepdims=True)
                  + b3[:, j:j + 1])
            take = lj > best_val
            best_val = jnp.where(take, lj, best_val)
            best_idx = jnp.where(take, jnp.float32(j), best_idx)

        # Two masked stores instead of a lane-axis concatenate.
        out_ref[pl.ds(r, sub), :3] = xc[:, :3]
        out_ref[pl.ds(r, sub), 3:4] = best_idx
        return carry

    jax.lax.fori_loop(0, num_sub, body, None, unroll=True)


def _round_up(a, b):
    return (a + b - 1) // b * b


def classifier_forward(x, params, *, tm=2048):
    """x: [B, N, 132] float32 -> [B, N, 4] float32 (coords + class id).

    tm: row tile size. 2048 is safe on all generations (double-buffered x tile
    ~4 MiB); sweep up to 4096 on v5e/v7x and up to 8192 on v6e if desired.
    """
    w1, b1, w2, b2, w3, b3 = params
    B, N, D = x.shape
    assert D == D_IN
    k = w3.shape[1]
    M = B * N

    # Clamp tile for tiny inputs, keep it sublane-aligned, pad rows so the grid
    # divides exactly (pad rows produce garbage class ids, sliced off after).
    tm_eff = _round_up(min(tm, _round_up(M, 8)), 8)
    m_pad = _round_up(M, tm_eff)

    x2 = x.reshape(M, D_IN)
    if m_pad != M:
        x2 = jnp.pad(x2, ((0, m_pad - M), (0, 0)))

    # Inner sub-chunk size: largest of these that divides the tile.
    sub = next(s for s in (256, 128, 64, 32, 16, 8) if tm_eff % s == 0)
    num_sub = tm_eff // sub

    # bf16 MXU operands for fc1/fc2 (f32 accumulation in the kernel);
    # fc3 stays f32 on the VPU, weights pre-transposed for sublane slicing.
    w1b = w1.astype(jnp.bfloat16)
    w2b = w2.astype(jnp.bfloat16)
    w3t = jnp.transpose(w3)                                        # (k, 32) f32

    kernel = functools.partial(_classifier_kernel, sub=sub, num_sub=num_sub, k=k)

    out = pl.pallas_call(
        kernel,
        out_shape=jax.ShapeDtypeStruct((m_pad, 4), jnp.float32),
        grid_spec=pltpu.PrefetchScalarGridSpec(
            num_scalar_prefetch=0,
            grid=(m_pad // tm_eff,),
            in_specs=[
                pl.BlockSpec((tm_eff, D_IN), lambda i: (i, 0)),
                pl.BlockSpec((D_IN, D_H1), lambda i: (0, 0)),
                pl.BlockSpec((1, D_H1), lambda i: (0, 0)),
                pl.BlockSpec((D_H1, D_H2), lambda i: (0, 0)),
                pl.BlockSpec((1, D_H2), lambda i: (0, 0)),
                pl.BlockSpec((k, D_H2), lambda i: (0, 0)),
                pl.BlockSpec((1, k), lambda i: (0, 0)),
            ],
            out_specs=pl.BlockSpec((tm_eff, 4), lambda i: (i, 0)),
        ),
        compiler_params=pltpu.CompilerParams(
            dimension_semantics=("parallel",)),
    )(x2, w1b, b1, w2b, b2, w3t, b3)

    return out[:M].reshape(B, N, 4)


def init_params(key, k):
    """Deterministic parameter init (shapes match nn.Linear(132,64),(64,32),(32,k))."""
    keys = jax.random.split(key, 6)

    def lin(kw, kb, fan_in, fan_out):
        bound = 1.0 / jnp.sqrt(fan_in)
        w = jax.random.uniform(kw, (fan_in, fan_out), jnp.float32, -bound, bound)
        b = jax.random.uniform(kb, (1, fan_out), jnp.float32, -bound, bound)
        return w, b

    w1, b1 = lin(keys[0], keys[1], D_IN, D_H1)
    w2, b2 = lin(keys[2], keys[3], D_H1, D_H2)
    w3, b3 = lin(keys[4], keys[5], D_H2, k)
    return (w1, b1, w2, b2, w3, b3)


def reference_forward_f32(x, params):
    """Pure-f32 reference matching the PyTorch module exactly (documentation)."""
    w1, b1, w2, b2, w3, b3 = params
    h = jax.nn.relu(jnp.dot(x, w1) + b1)
    h = jax.nn.relu(jnp.dot(h, w2) + b2)
    logits = jnp.dot(h, w3) + b3
    cls = jnp.argmax(logits, axis=2).astype(jnp.float32)
    return jnp.concatenate([x[:, :, :3], cls[..., None]], axis=2)


def _parity_logits(x, params):
    """Reference logits with the SAME bf16 MXU-input casts the kernel uses
    (fc1/fc2 bf16 operands + f32 accumulation, fc3 exact f32)."""
    w1, b1, w2, b2, w3, b3 = params
    h = jax.nn.relu(jnp.dot(x.astype(jnp.bfloat16), w1.astype(jnp.bfloat16),
                            preferred_element_type=jnp.float32) + b1)
    h = jax.nn.relu(jnp.dot(h.astype(jnp.bfloat16), w2.astype(jnp.bfloat16),
                            preferred_element_type=jnp.float32) + b2)
    return jnp.dot(h, w3, precision=jax.lax.Precision.HIGHEST) + b3


def _check(out, x, params, name):
    assert out.shape == (*x.shape[:2], 4), (name, out.shape)
    # Coordinates are a pure passthrough -> exact match.
    assert jnp.array_equal(out[..., :3], x[..., :3]), f"{name}: coord mismatch"
    # Class ids vs the bf16-matched parity reference; any remaining mismatch
    # must be a numerical near-tie (MXU vs XLA accumulation order).
    logits = _parity_logits(x, params)
    ref_cls = jnp.argmax(logits, axis=2).astype(jnp.int32)
    out_cls = out[..., 3].astype(jnp.int32)
    mism = out_cls != ref_cls
    if bool(jnp.any(mism)):
        g_ref = jnp.take_along_axis(logits, ref_cls[..., None], axis=-1)[..., 0]
        g_out = jnp.take_along_axis(logits, out_cls[..., None], axis=-1)[..., 0]
        ok = jnp.where(mism, jnp.abs(g_ref - g_out) < 1e-3, True)
        assert bool(jnp.all(ok)), f"{name}: class mismatch beyond tie tolerance"


if __name__ == "__main__":
    key = jax.random.PRNGKey(0)
    kx1, kx2, kp = jax.random.split(key, 3)

    k = 5
    params = init_params(kp, k)

    # Small demo (tm clamps to 16 rows, single grid step, sub=16).
    x_small = jax.random.normal(kx1, (2, 8, D_IN), dtype=jnp.float32)
    out_small = jax.block_until_ready(classifier_forward(x_small, params))
    _check(out_small, x_small, params, "small")

    # Larger check exercising the performance path: 2048-row tile, row padding
    # (4000 -> 4096), 2-step grid, unrolled 256-row inner sub-chunk loop.
    x_large = jax.random.normal(kx2, (4, 1000, D_IN), dtype=jnp.float32)
    out_large = jax.block_until_ready(classifier_forward(x_large, params))
    _check(out_large, x_large, params, "large")

    print("KERNEL_OK")
</pallas_src>

<mosaic_0001>
module attributes {stable_mosaic.version = 11 : i64} {
  func.func @_classifier_kernel(%arg0: i32, %arg1: memref<16x132xf32, #tpu.memory_space<vmem>>, %arg2: memref<132x64xbf16, #tpu.memory_space<vmem>>, %arg3: memref<1x64xf32, #tpu.memory_space<vmem>>, %arg4: memref<64x32xbf16, #tpu.memory_space<vmem>>, %arg5: memref<1x32xf32, #tpu.memory_space<vmem>>, %arg6: memref<5x32xf32, #tpu.memory_space<vmem>>, %arg7: memref<1x5xf32, #tpu.memory_space<vmem>>, %arg8: memref<16x4xf32, #tpu.memory_space<vmem>>) attributes {dimension_semantics = [#tpu.dimension_semantics<parallel>], iteration_bounds = array<i64: 1>, scalar_prefetch = 0 : i64, scratch_operands = 0 : i64, tpu.core_type = #tpu.core_type<tc>, window_params = [{transform_indices = @transform_0, window_bounds = array<i64: 16, 132>}, {pipeline_mode = #tpu.pipeline_mode<synchronous>, transform_indices = @transform_1, window_bounds = array<i64: 132, 64>}, {pipeline_mode = #tpu.pipeline_mode<synchronous>, transform_indices = @transform_2, window_bounds = array<i64: 1, 64>}, {pipeline_mode = #tpu.pipeline_mode<synchronous>, transform_indices = @transform_3, window_bounds = array<i64: 64, 32>}, {pipeline_mode = #tpu.pipeline_mode<synchronous>, transform_indices = @transform_4, window_bounds = array<i64: 1, 32>}, {pipeline_mode = #tpu.pipeline_mode<synchronous>, transform_indices = @transform_5, window_bounds = array<i64: 5, 32>}, {pipeline_mode = #tpu.pipeline_mode<synchronous>, transform_indices = @transform_6, window_bounds = array<i64: 1, 5>}, {transform_indices = @transform_7, window_bounds = array<i64: 16, 4>}]} {
    %c0_i32 = arith.constant 0 : i32
    %c16_i32 = arith.constant 16 : i32
    %0 = arith.muli %c0_i32, %c16_i32 : i32
    %1 = tpu.assume_multiple %0, 16 : i32
    %2 = arith.index_cast %1 : i32 to index
    %c0 = arith.constant 0 : index
    %3 = vector.load %arg1[%2, %c0] : memref<16x132xf32, #tpu.memory_space<vmem>>, vector<16x132xf32>
    %4 = arith.truncf %3 : vector<16x132xf32> to vector<16x132xbf16>
    %c0_0 = arith.constant 0 : index
    %c0_1 = arith.constant 0 : index
    %5 = vector.load %arg2[%c0_0, %c0_1] : memref<132x64xbf16, #tpu.memory_space<vmem>>, vector<132x64xbf16>
    %cst = arith.constant dense<0.000000e+00> : vector<16x64xf32>
    %6 = tpu.matmul %4, %5, %cst {dimension_numbers = #tpu.dot_dimension_numbers<[1], [0], [0], [1], [0, 0, 1, 1], [], []>} : vector<16x132xbf16>, vector<132x64xbf16>, vector<16x64xf32> -> vector<16x64xf32>
    %c0_2 = arith.constant 0 : index
    %c0_3 = arith.constant 0 : index
    %7 = vector.load %arg3[%c0_2, %c0_3] : memref<1x64xf32, #tpu.memory_space<vmem>>, vector<1x64xf32>
    %8 = vector.broadcast %7 : vector<1x64xf32> to vector<16x64xf32>
    %9 = arith.addf %6, %8 : vector<16x64xf32>
    %cst_4 = arith.constant 0.000000e+00 : f32
    %10 = vector.broadcast %cst_4 : f32 to vector<16x64xf32>
    %11 = arith.maximumf %9, %10 : vector<16x64xf32>
    %12 = arith.truncf %11 : vector<16x64xf32> to vector<16x64xbf16>
    %c0_5 = arith.constant 0 : index
    %c0_6 = arith.constant 0 : index
    %13 = vector.load %arg4[%c0_5, %c0_6] : memref<64x32xbf16, #tpu.memory_space<vmem>>, vector<64x32xbf16>
    %cst_7 = arith.constant dense<0.000000e+00> : vector<16x32xf32>
    %14 = tpu.matmul %12, %13, %cst_7 {dimension_numbers = #tpu.dot_dimension_numbers<[1], [0], [0], [1], [0, 0, 1, 1], [], []>} : vector<16x64xbf16>, vector<64x32xbf16>, vector<16x32xf32> -> vector<16x32xf32>
    %c0_8 = arith.constant 0 : index
    %c0_9 = arith.constant 0 : index
    %15 = vector.load %arg5[%c0_8, %c0_9] : memref<1x32xf32, #tpu.memory_space<vmem>>, vector<1x32xf32>
    %16 = vector.broadcast %15 : vector<1x32xf32> to vector<16x32xf32>
    %17 = arith.addf %14, %16 : vector<16x32xf32>
    %cst_10 = arith.constant 0.000000e+00 : f32
    %18 = vector.broadcast %cst_10 : f32 to vector<16x32xf32>
    %19 = arith.maximumf %17, %18 : vector<16x32xf32>
    %c0_11 = arith.constant 0 : index
    %c0_12 = arith.constant 0 : index
    %20 = vector.load %arg6[%c0_11, %c0_12] : memref<5x32xf32, #tpu.memory_space<vmem>>, vector<5x32xf32>
    %c0_13 = arith.constant 0 : index
    %c0_14 = arith.constant 0 : index
    %21 = vector.load %arg7[%c0_13, %c0_14] : memref<1x5xf32, #tpu.memory_space<vmem>>, vector<1x5xf32>
    %22 = vector.extract_strided_slice %20 {offsets = [0, 0], sizes = [1, 32], strides = [1, 1]} : vector<5x32xf32> to vector<1x32xf32>
    %23 = vector.broadcast %22 : vector<1x32xf32> to vector<16x32xf32>
    %24 = arith.mulf %19, %23 : vector<16x32xf32>
    %cst_15 = arith.constant dense<0.000000e+00> : vector<16xf32>
    %25 = vector.multi_reduction <add>, %24, %cst_15 [1] : vector<16x32xf32> to vector<16xf32>
    %26 = vector.shape_cast %25 : vector<16xf32> to vector<16x1xf32>
    %27 = vector.extract_strided_slice %21 {offsets = [0, 0], sizes = [1, 1], strides = [1, 1]} : vector<1x5xf32> to vector<1x1xf32>
    %28 = vector.broadcast %27 : vector<1x1xf32> to vector<16x1xf32>
    %29 = arith.addf %26, %28 : vector<16x1xf32>
    %cst_16 = arith.constant 0.000000e+00 : f32
    %30 = vector.broadcast %cst_16 : f32 to vector<16x1xf32>
    %31 = vector.extract_strided_slice %20 {offsets = [1, 0], sizes = [1, 32], strides = [1, 1]} : vector<5x32xf32> to vector<1x32xf32>
    %32 = vector.broadcast %31 : vector<1x32xf32> to vector<16x32xf32>
    %33 = arith.mulf %19, %32 : vector<16x32xf32>
    %cst_17 = arith.constant dense<0.000000e+00> : vector<16xf32>
    %34 = vector.multi_reduction <add>, %33, %cst_17 [1] : vector<16x32xf32> to vector<16xf32>
    %35 = vector.shape_cast %34 : vector<16xf32> to vector<16x1xf32>
    %36 = vector.extract_strided_slice %21 {offsets = [0, 1], sizes = [1, 1], strides = [1, 1]} : vector<1x5xf32> to vector<1x1xf32>
    %37 = vector.broadcast %36 : vector<1x1xf32> to vector<16x1xf32>
    %38 = arith.addf %35, %37 : vector<16x1xf32>
    %39 = arith.cmpf ogt, %38, %29 : vector<16x1xf32>
    %40 = arith.select %39, %38, %29 : vector<16x1xi1>, vector<16x1xf32>
    %cst_18 = arith.constant 1.000000e+00 : f32
    %41 = vector.broadcast %cst_18 : f32 to vector<16x1xf32>
    %42 = arith.select %39, %41, %30 : vector<16x1xi1>, vector<16x1xf32>
    %43 = vector.extract_strided_slice %20 {offsets = [2, 0], sizes = [1, 32], strides = [1, 1]} : vector<5x32xf32> to vector<1x32xf32>
    %44 = vector.broadcast %43 : vector<1x32xf32> to vector<16x32xf32>
    %45 = arith.mulf %19, %44 : vector<16x32xf32>
    %cst_19 = arith.constant dense<0.000000e+00> : vector<16xf32>
    %46 = vector.multi_reduction <add>, %45, %cst_19 [1] : vector<16x32xf32> to vector<16xf32>
    %47 = vector.shape_cast %46 : vector<16xf32> to vector<16x1xf32>
    %48 = vector.extract_strided_slice %21 {offsets = [0, 2], sizes = [1, 1], strides = [1, 1]} : vector<1x5xf32> to vector<1x1xf32>
    %49 = vector.broadcast %48 : vector<1x1xf32> to vector<16x1xf32>
    %50 = arith.addf %47, %49 : vector<16x1xf32>
    %51 = arith.cmpf ogt, %50, %40 : vector<16x1xf32>
    %52 = arith.select %51, %50, %40 : vector<16x1xi1>, vector<16x1xf32>
    %cst_20 = arith.constant 2.000000e+00 : f32
    %53 = vector.broadcast %cst_20 : f32 to vector<16x1xf32>
    %54 = arith.select %51, %53, %42 : vector<16x1xi1>, vector<16x1xf32>
    %55 = vector.extract_strided_slice %20 {offsets = [3, 0], sizes = [1, 32], strides = [1, 1]} : vector<5x32xf32> to vector<1x32xf32>
    %56 = vector.broadcast %55 : vector<1x32xf32> to vector<16x32xf32>
    %57 = arith.mulf %19, %56 : vector<16x32xf32>
    %cst_21 = arith.constant dense<0.000000e+00> : vector<16xf32>
    %58 = vector.multi_reduction <add>, %57, %cst_21 [1] : vector<16x32xf32> to vector<16xf32>
    %59 = vector.shape_cast %58 : vector<16xf32> to vector<16x1xf32>
    %60 = vector.extract_strided_slice %21 {offsets = [0, 3], sizes = [1, 1], strides = [1, 1]} : vector<1x5xf32> to vector<1x1xf32>
    %61 = vector.broadcast %60 : vector<1x1xf32> to vector<16x1xf32>
    %62 = arith.addf %59, %61 : vector<16x1xf32>
    %63 = arith.cmpf ogt, %62, %52 : vector<16x1xf32>
    %64 = arith.select %63, %62, %52 : vector<16x1xi1>, vector<16x1xf32>
    %cst_22 = arith.constant 3.000000e+00 : f32
    %65 = vector.broadcast %cst_22 : f32 to vector<16x1xf32>
    %66 = arith.select %63, %65, %54 : vector<16x1xi1>, vector<16x1xf32>
    %67 = vector.extract_strided_slice %20 {offsets = [4, 0], sizes = [1, 32], strides = [1, 1]} : vector<5x32xf32> to vector<1x32xf32>
    %68 = vector.broadcast %67 : vector<1x32xf32> to vector<16x32xf32>
    %69 = arith.mulf %19, %68 : vector<16x32xf32>
    %cst_23 = arith.constant dense<0.000000e+00> : vector<16xf32>
    %70 = vector.multi_reduction <add>, %69, %cst_23 [1] : vector<16x32xf32> to vector<16xf32>
    %71 = vector.shape_cast %70 : vector<16xf32> to vector<16x1xf32>
    %72 = vector.extract_strided_slice %21 {offsets = [0, 4], sizes = [1, 1], strides = [1, 1]} : vector<1x5xf32> to vector<1x1xf32>
    %73 = vector.broadcast %72 : vector<1x1xf32> to vector<16x1xf32>
    %74 = arith.addf %71, %73 : vector<16x1xf32>
    %75 = arith.cmpf ogt, %74, %64 : vector<16x1xf32>
    %cst_24 = arith.constant 4.000000e+00 : f32
    %76 = vector.broadcast %cst_24 : f32 to vector<16x1xf32>
    %77 = arith.select %75, %76, %66 : vector<16x1xi1>, vector<16x1xf32>
    %78 = vector.extract_strided_slice %3 {offsets = [0, 0], sizes = [16, 3], strides = [1, 1]} : vector<16x132xf32> to vector<16x3xf32>
    %79 = arith.index_cast %1 : i32 to index
    %c0_25 = arith.constant 0 : index
    %80 = vector.load %arg8[%79, %c0_25] : memref<16x4xf32, #tpu.memory_space<vmem>>, vector<16x3xf32>
    tpu.vector_store %arg8[%79, %c0_25], %78 {strides = array<i32>} : memref<16x4xf32, #tpu.memory_space<vmem>>, vector<16x3xf32>,
    %81 = arith.index_cast %1 : i32 to index
    %c3 = arith.constant 3 : index
    %82 = vector.load %arg8[%81, %c3] : memref<16x4xf32, #tpu.memory_space<vmem>>, vector<16x1xf32>
    tpu.vector_store %arg8[%81, %c3], %77 {strides = array<i32>} : memref<16x4xf32, #tpu.memory_space<vmem>>, vector<16x1xf32>,
    %c1_i32 = arith.constant 1 : i32
    return
  }
  func.func @transform_0(%arg0: i32) -> (i32, i32) {
    %c0_i32 = arith.constant 0 : i32
    %c0_i32_0 = arith.constant 0 : i32
    return %arg0, %c0_i32 : i32, i32
  }
  func.func @transform_1(%arg0: i32) -> (i32, i32) {
    %c0_i32 = arith.constant 0 : i32
    %c0_i32_0 = arith.constant 0 : i32
    %c0_i32_1 = arith.constant 0 : i32
    return %c0_i32, %c0_i32_0 : i32, i32
  }
  func.func @transform_2(%arg0: i32) -> (i32, i32) {
    %c0_i32 = arith.constant 0 : i32
    %c0_i32_0 = arith.constant 0 : i32
    %c0_i32_1 = arith.constant 0 : i32
    return %c0_i32, %c0_i32_0 : i32, i32
  }
  func.func @transform_3(%arg0: i32) -> (i32, i32) {
    %c0_i32 = arith.constant 0 : i32
    %c0_i32_0 = arith.constant 0 : i32
    %c0_i32_1 = arith.constant 0 : i32
    return %c0_i32, %c0_i32_0 : i32, i32
  }
  func.func @transform_4(%arg0: i32) -> (i32, i32) {
    %c0_i32 = arith.constant 0 : i32
    %c0_i32_0 = arith.constant 0 : i32
    %c0_i32_1 = arith.constant 0 : i32
    return %c0_i32, %c0_i32_0 : i32, i32
  }
  func.func @transform_5(%arg0: i32) -> (i32, i32) {
    %c0_i32 = arith.constant 0 : i32
    %c0_i32_0 = arith.constant 0 : i32
    %c0_i32_1 = arith.constant 0 : i32
    return %c0_i32, %c0_i32_0 : i32, i32
  }
  func.func @transform_6(%arg0: i32) -> (i32, i32) {
    %c0_i32 = arith.constant 0 : i32
    %c0_i32_0 = arith.constant 0 : i32
    %c0_i32_1 = arith.constant 0 : i32
    return %c0_i32, %c0_i32_0 : i32, i32
  }
  func.func @transform_7(%arg0: i32) -> (i32, i32) {
    %c0_i32 = arith.constant 0 : i32
    %c0_i32_0 = arith.constant 0 : i32
    return %arg0, %c0_i32 : i32, i32
  }
}

</mosaic_0001>

<bundles_post_ra>
// kernel: tpu_custom_call.1
= control target key start
LH: loop header
LB: loop body
LE: loop exit
PB: predicated region body
PF: predicated region fallthrough
CT: control target
= control target key end

     0   :  { %v497_v0 = vmov 0   ;;  %v498_v2 = vmov 0.0   ;;  %vm406_vm0 = vcmask 23552   ;;  %vm111_vm1 = vcmask 31744   ;;  %s500_s18 = smov 1   ;;  %s657_s1 = inlined_call_operand.vmem [shape: bf16[132,64], index: 1, kind: input, shape index: {}]   ;;  %s658_s0 = inlined_call_operand.vmem [shape: f32[16,132], index: 0, kind: input, shape index: {}]   ;;  %s659_s7 = inlined_call_operand.vmem [shape: f32[16,4], index: 7, kind: output, shape index: {}]   ;;  %s660_s3 = inlined_call_operand.vmem [shape: bf16[64,32], index: 3, kind: input, shape index: {}]   ;;  %s661_s2 = inlined_call_operand.vmem [shape: f32[1,64], index: 2, kind: input, shape index: {}]   ;;  %s662_s5 = inlined_call_operand.vmem [shape: f32[5,32], index: 5, kind: input, shape index: {}]   ;;  %s663_s4 = inlined_call_operand.vmem [shape: f32[1,32], index: 4, kind: input, shape index: {}]   ;;  %s664_s6 = inlined_call_operand.vmem [shape: f32[1,5], index: 6, kind: input, shape index: {}]  }
   0x1   :  { %119 = vmatprep.subr.bf16.mxu0 %v497_v0  ;;  %v484_v1 = vld [vmem:[%s657_s1] sm:$0xff]   ;;  %447 = vmatprep.subr.bf16.mxu1 %v498_v2  ;;  %v485_v3 = vld [vmem:[%s657_s1 + $0x8] sm:$0xff]   ;;  %v486_v4 = vld [vmem:[%s657_s1 + $0x10] sm:$0xff]   ;;  %vm115_vm2 = vcmask 1041408   ;;  %vm499_vm3 = vmmov 0   ;;  %vm202_vm4 = vcmask 523264   ;;  %v251_v32 = vlaneseq }
   0x2   :  { %120 = vmatpush1.bf16.msra.mxu0 %v484_v1  ;;  %v487_v5 = vld [vmem:[%s657_s1 + $0x18] sm:$0xff]   ;;  %v31_v6 = vld [vmem:[%s658_s0 + $0x8] sm:$0xff]  ;;  %v30_v8 = vld [vmem:[%s658_s0] sm:$0xff]  ;;  %455 = vmatprep.mubr.msk.bf16.mxu1 %vm499_vm3, %v498_v2  ;;  %vm257_vm5 = vcmask 261120   ;;  %vm417_vm14 = vcmask 31768  }
   0x3   :  { %121 = vmatprep.subr.bf16.mxu0 %v497_v0  ;;  %v33_v7 = vld [vmem:[%s658_s0 + $0x18] sm:$0xff]  ;;  %v32_v9 = vld [vmem:[%s658_s0 + $0x10] sm:$0xff]  ;;  %407 = vst.msk [vmem:[%s659_s7] sm:$0xff] %vm406_vm0, %v30_v8  ;;  %v493_v11 = vld [vmem:[%s660_s3] sm:$0xff]   ;;  %v252_v33 = vshrl.u32 %v251_v32, 7 }
   0x4   :  { %v35_v10 = vpack.c.bf16 %v33_v7, %v31_v6  ;;  %408 = vst.msk [vmem:[%s659_s7 + $0x8] sm:$0xff] %vm406_vm0, %v32_v9  ;;  %448 = vmatpush3.bf16.msra.mxu1 %v493_v11  ;;  %v494_v12 = vld [vmem:[%s660_s3 + $0x8] sm:$0xff]   ;;  %v488_v13 = vld [vmem:[%s657_s1 + $0x20] sm:$0xff]   ;;  %v490_v15 = vld [vmem:[%s657_s1 + $0x30] sm:$0xff]   ;;  %v34_v19 = vpack.c.bf16 %v32_v9, %v30_v8 }
   0x5   :  { %449 = vmatprep.subr.bf16.mxu1 %v498_v2  ;;  %v489_v14 = vld [vmem:[%s657_s1 + $0x28] sm:$0xff]   ;;  %v491_v16 = vld [vmem:[%s657_s1 + $0x38] sm:$0xff]   ;;  %v492_v17 = vld [vmem:[%s657_s1 + $0x40] ss:$0 sps:$4 sm:$0x33]   ;;  %v302_v34 = vsub.s32 2, %v252_v33 }
   0x6   :  { %122 = vmatpush1.bf16.msra.mxu0 %v485_v3  ;;  %434 = vmatprep.mubr.msk.bf16.mxu0 %vm111_vm1, %v35_v10  ;;  %v117_v18 = vsel %vm115_vm2, %v492_v17, 0  ;;  %v495_v20 = vld [vmem:[%s660_s3 + $0x10] sm:$0xff]   ;;  %v496_v21 = vld [vmem:[%s660_s3 + $0x18] sm:$0xff]   ;;  %v424_v22 = vld [vmem:[%s661_s2] ss:$0 sm:$0xff]  ;;  %v338_v36 = vsub.s32 3, %v252_v33 }
   0x7   :  { %123 = vmatprep.subr.bf16.mxu0 %v497_v0  ;;  %v249_v35 = vld [vmem:[%s662_s5] sm:$0x1f]  ;;  %v374_v37 = vsub.s32 4, %v252_v33  ;;  %v274_v41 = vsub.s32 1, %v252_v33  ;;  %v253_v42 = vsub.s32 0, %v252_v33 }
   0x8   :  { %450 = vmatpush3.bf16.msra.mxu1 %v494_v12  ;;  %v303_v38 = vrot.slane %v249_v35, %v302_v34  ;;  %v339_v39 = vrot.slane %v249_v35, %v338_v36  ;;  %v435_v43 = vld [vmem:[%s663_s4] ss:$0 sm:$0xff] }
   0x9   :  { %451 = vmatprep.subr.bf16.mxu1 %v498_v2  ;;  %v375_v40 = vrot.slane %v249_v35, %v374_v37  ;;  %v275_v47 = vrot.slane %v249_v35, %v274_v41  ;;  %v254_v48 = vrot.slane %v249_v35, %v253_v42  ;;  %v626_v11 = vld [vmem:[%s664_s6] ss:$0 sm:$0xff]  ;;  %s501_s6 = smov 127  }
   0xa   :  { %124 = vmatpush1.bf16.msra.mxu0 %v486_v4 }
   0xb   :  { %125 = vmatprep.subr.bf16.mxu0 %v497_v0 }
   0xc   :  { %452 = vmatpush3.bf16.msra.mxu1 %v495_v20 }
   0xd   :  { %453 = vmatprep.subr.bf16.mxu1 %v498_v2 }
   0xe   :  { %126 = vmatpush1.bf16.msra.mxu0 %v487_v5 }
   0xf   :  { %127 = vmatprep.subr.bf16.mxu0 %v497_v0 }
  0x10   :  { %454 = vmatpush3.bf16.msra.mxu1 %v496_v21 }
  0x12   :  { %128 = vmatpush1.bf16.msra.mxu0 %v488_v13 }
  0x13   :  { %129 = vmatprep.subr.bf16.mxu0 %v497_v0 }
  0x16   :  { %130 = vmatpush1.bf16.msra.mxu0 %v489_v14 }
  0x17   :  { %131 = vmatprep.subr.bf16.mxu0 %v497_v0 }
  0x1a   :  { %132 = vmatpush1.bf16.msra.mxu0 %v490_v15 }
  0x1b   :  { %133 = vmatprep.subr.bf16.mxu0 %v497_v0 }
  0x1e   :  { %134 = vmatpush1.bf16.msra.mxu0 %v491_v16 }
  0x1f   :  { %135 = vmatprep.subr.bf16.mxu0 %v497_v0 }
  0x22   :  { %136 = vmatpush1.bf16.msra.mxu0 %v117_v18 }
  0x25   :  { %152 = vmatmul.mubr.bf16.vlgmr.msra.gmra.mrb[0].mxu0 %v34_v19 }
  0xf8   :  { %v153_v23 = vpop.f32.mrb[0].mxu0 }
  0xf9   :  { %v154_v24 = vadd.f32 %v424_v22, %v153_v23  ;;  %v155_v25 = vpop.f32.mrb[1].mxu0 }
  0xfa   :  { %v156_v26 = vpop.f32.mrb[2].mxu0 }
  0xfb   :  { %v157_v27 = vadd.f32 %v424_v22, %v156_v26  ;;  %v158_v28 = vpop.f32.mrb[3].mxu0  ;;  %v160_v29 = vmax.f32 %v154_v24, 0.0 }
  0xfd   :  { %v161_v30 = vmax.f32 %v157_v27, 0.0 }
  0xff   :  { %v162_v31 = vpack.c.bf16 %v161_v30, %v160_v29 }
 0x101   :  { %456 = vmatmul.mubr.msk.bf16.vlgmr.msra.gmra.mrb[0].mxu1 %vm202_vm4, %v162_v31 }
 0x1d4   :  { %v240_v44 = vpop.f32.mrb[0].mxu1 }
 0x1d5   :  { %v241_v45 = vadd.f32 %v435_v43, %v240_v44  ;;  %v457_v46 = vpop.f32.mrb[1].mxu1 }
 0x1d6   :  { %v243_v49 = vpop.f32.mrb[2].mxu1 }
 0x1d7   :  { %v247_v50 = vmax.f32 %v241_v45, 0.0  ;;  %v244_v51 = vadd.f32 %v435_v43, %v243_v49  ;;  %v458_v52 = vpop.f32.mrb[3].mxu1 }
 0x1d9   :  { %v248_v53 = vmax.f32 %v244_v51, 0.0  ;;  %v276_v54 = vmul.f32 %v275_v47, %v247_v50  ;;  %v255_v55 = vmul.f32 %v254_v48, %v247_v50  ;;  %v304_v56 = vmul.f32 %v303_v38, %v247_v50 }
 0x1da   :  { %v340_v57 = vmul.f32 %v339_v39, %v247_v50  ;;  %v376_v58 = vmul.f32 %v375_v40, %v247_v50 }
 0x1db   :  { %v278_v59 = vsel %vm257_vm5, %v276_v54, 0.0  ;;  %v258_v60 = vsel %vm257_vm5, %v255_v55, 0.0  ;;  %v277_v61 = vmul.f32 %v275_v47, %v248_v53  ;;  %v256_v62 = vmul.f32 %v254_v48, %v248_v53 }
 0x1dc   :  { %279 = vadd.xlane.f32.xlu1 %v278_v59  ;;  %259 = vadd.xlane.f32.xlu0 %v258_v60  ;;  %v305_v63 = vmul.f32 %v303_v38, %v248_v53  ;;  %v306_v0 = vsel %vm257_vm5, %v304_v56, 0.0  ;;  %v341_v1 = vmul.f32 %v339_v39, %v248_v53  ;;  %v342_v3 = vsel %vm257_vm5, %v340_v57, 0.0 }
 0x1dd   :  { %v378_v4 = vsel %vm257_vm5, %v376_v58, 0.0  ;;  %v377_v5 = vmul.f32 %v375_v40, %v248_v53  ;;  %v281_v8 = vsel %vm257_vm5, %v277_v61, 0.0  ;;  %v261_v9 = vsel %vm257_vm5, %v256_v62, 0.0 }
 0x1de   :  { %v309_v6 = vsel %vm257_vm5, %v305_v63, 0.0  ;;  %v345_v7 = vsel %vm257_vm5, %v341_v1, 0.0 }
 0x1df   :  { %v381_v10 = vsel %vm257_vm5, %v377_v5, 0.0 }
 0x1e0   :  { %282 = vadd.xlane.f32.xlu1 %v281_v8  ;;  %262 = vadd.xlane.f32.xlu0 %v261_v9 }
 0x269   :  { %v260_v12 = vpop.xlane.xlu0 %259  ;;  %v280_v16 = vpop.xlane.xlu1 %279 }
 0x26a   :  { %v270_v13 = vadd.f32 %v626_v11, %v260_v12  ;;  %v284_v17 = vadd.f32 %v626_v11, %v280_v16 }
 0x26c   :  { %288 = vrot.lane.b32.xlu0 %v270_v13, %s500_s18 }
 0x26d   :  { %v263_v14 = vpop.xlane.xlu0 %262  ;;  %v283_v18 = vpop.xlane.xlu1 %282 }
 0x26e   :  { %v271_v15 = vadd.f32 %v626_v11, %v263_v14  ;;  %v285_v21 = vadd.f32 %v626_v11, %v283_v18 }
 0x270   :  { %290 = vrot.lane.b32.xlu1 %v271_v15, %s500_s18 }
 0x28b   :  { %310 = vadd.xlane.f32.xlu0 %v309_v6 }
 0x294   :  { %307 = vadd.xlane.f32.xlu1 %v306_v0 }
 0x2de   :  { %v289_v19 = vpop.permute.xlu0 %288 }
 0x2df   :  { %vm294_vm6 = vcmp.gt.f32.partialorder %v284_v17, %v289_v19 }
 0x2e0   :  { %v296_v20 = vsel %vm294_vm6, %v284_v17, %v289_v19  ;;  %v298_v25 = vsel %vm294_vm6, 1.0, %v498_v2 }
 0x2e1   :  { %316 = vrot.lane.b32.xlu0 %v296_v20, %s500_s18 }
 0x2e2   :  { %v291_v22 = vpop.permute.xlu1 %290 }
 0x2e3   :  { %vm295_vm7 = vcmp.gt.f32.partialorder %v285_v21, %v291_v22 }
 0x2e4   :  { %v299_v23 = vsel %vm295_vm7, 1.0, %v498_v2  ;;  %v297_v24 = vsel %vm295_vm7, %v285_v21, %v291_v22 }
 0x2e5   :  { %318 = vrot.lane.b32.xlu1 %v297_v24, %s500_s18  ;;  %v464_v26 = vpack.i.bf16 %v299_v23, %v298_v25 }
 0x2e9   :  { %465 = vrot.lane.b32.xlu1 %v464_v26, %s500_s18 }
 0x300   :  { %346 = vadd.xlane.f32.xlu0 %v345_v7 }
 0x30d   :  { %343 = vadd.xlane.f32.xlu1 %v342_v3 }
 0x318   :  { %v311_v27 = vpop.xlane.xlu0 %310 }
 0x319   :  { %v313_v32 = vadd.f32 %v626_v11, %v311_v27 }
 0x321   :  { %v308_v28 = vpop.xlane.xlu1 %307 }
 0x322   :  { %v312_v29 = vadd.f32 %v626_v11, %v308_v28 }
 0x353   :  { %v317_v30 = vpop.permute.xlu0 %316 }
 0x354   :  { %vm322_vm8 = vcmp.gt.f32.partialorder %v312_v29, %v317_v30 }
 0x355   :  { %v324_v31 = vsel %vm322_vm8, %v312_v29, %v317_v30 }
 0x356   :  { %352 = vrot.lane.b32.xlu0 %v324_v31, %s500_s18 }
 0x357   :  { %v319_v33 = vpop.permute.xlu1 %318 }
 0x358   :  { %vm323_vm9 = vcmp.gt.f32.partialorder %v313_v32, %v319_v33 }
 0x359   :  { %v325_v34 = vsel %vm323_vm9, %v313_v32, %v319_v33 }
 0x35a   :  { %354 = vrot.lane.b32.xlu1 %v325_v34, %s500_s18 }
 0x35b   :  { %v466_v2 = vpop.permute.xlu1 %465 }
 0x35c   :  { %v468_v35 = vunpack.i.h.bf16 %v466_v2  ;;  %v467_v36 = vunpack.i.l.bf16 %v466_v2 }
 0x35e   :  { %v334_v37 = vsel %vm322_vm8, 2.0, %v467_v36  ;;  %v335_v38 = vsel %vm323_vm9, 2.0, %v468_v35 }
 0x35f   :  { %v469_v39 = vpack.i.bf16 %v335_v38, %v334_v37 }
 0x361   :  { %470 = vrot.lane.b32.xlu1 %v469_v39, %s500_s18 }
 0x375   :  { %379 = vadd.xlane.f32.xlu0 %v378_v4 }
 0x385   :  { %382 = vadd.xlane.f32.xlu1 %v381_v10 }
 0x38d   :  { %v347_v40 = vpop.xlane.xlu0 %346 }
 0x38e   :  { %v349_v45 = vadd.f32 %v626_v11, %v347_v40 }
 0x39a   :  { %v344_v41 = vpop.xlane.xlu1 %343 }
 0x39b   :  { %v348_v42 = vadd.f32 %v626_v11, %v344_v41 }
 0x3c8   :  { %v353_v43 = vpop.permute.xlu0 %352 }
 0x3c9   :  { %vm358_vm10 = vcmp.gt.f32.partialorder %v348_v42, %v353_v43 }
 0x3ca   :  { %v360_v44 = vsel %vm358_vm10, %v348_v42, %v353_v43 }
 0x3cb   :  { %388 = vrot.lane.b32.xlu0 %v360_v44, %s500_s18 }
 0x3cc   :  { %v355_v46 = vpop.permute.xlu1 %354 }
 0x3cd   :  { %vm359_vm11 = vcmp.gt.f32.partialorder %v349_v45, %v355_v46 }
 0x3ce   :  { %v361_v47 = vsel %vm359_vm11, %v349_v45, %v355_v46 }
 0x3cf   :  { %390 = vrot.lane.b32.xlu1 %v361_v47, %s500_s18 }
 0x3d3   :  { %v471_v48 = vpop.permute.xlu1 %470 }
 0x3d4   :  { %v473_v49 = vunpack.i.h.bf16 %v471_v48  ;;  %v472_v50 = vunpack.i.l.bf16 %v471_v48 }
 0x3d6   :  { %v370_v51 = vsel %vm358_vm10, 3.0, %v472_v50  ;;  %v371_v52 = vsel %vm359_vm11, 3.0, %v473_v49 }
 0x3d7   :  { %v474_v53 = vpack.i.bf16 %v371_v52, %v370_v51 }
 0x3d9   :  { %475 = vrot.lane.b32.xlu0 %v474_v53, %s500_s18 }
 0x402   :  { %v380_v54 = vpop.xlane.xlu0 %379 }
 0x403   :  { %v384_v58 = vadd.f32 %v626_v11, %v380_v54 }
 0x412   :  { %v383_v55 = vpop.xlane.xlu1 %382 }
 0x413   :  { %v385_v59 = vadd.f32 %v626_v11, %v383_v55 }
 0x43d   :  { %v389_v56 = vpop.permute.xlu0 %388 }
 0x43e   :  { %vm394_vm12 = vcmp.gt.f32.partialorder %v384_v58, %v389_v56 }
 0x441   :  { %v391_v57 = vpop.permute.xlu1 %390 }
 0x442   :  { %vm395_vm13 = vcmp.gt.f32.partialorder %v385_v59, %v391_v57 }
 0x44b   :  { %v476_v60 = vpop.permute.xlu0 %475 }
 0x44c   :  { %v478_v61 = vunpack.i.h.bf16 %v476_v60  ;;  %v477_v62 = vunpack.i.l.bf16 %v476_v60 }
 0x44e   :  { %v405_v63 = vsel %vm395_vm13, 4.0, %v478_v61  ;;  %v404_v0 = vsel %vm394_vm12, 4.0, %v477_v62 }
 0x44f   :  { %v479_v1 = vpack.i.bf16 %v405_v63, %v404_v0 }
 0x451   :  { %480 = vrot.lane.b32.xlu1 %v479_v1, %s501_s6 }
 0x4c3   :  { %v481_v3 = vpop.permute.xlu1 %480 }
 0x4c4   :  { %v483_v4 = vunpack.i.h.bf16 %v481_v3  ;;  %v482_v5 = vunpack.i.l.bf16 %v481_v3 }
 0x4c6   :  { %419 = vst.msk [vmem:[%s659_s7 + $0x8] sm:$0xff] %vm417_vm14, %v483_v4  ;;  %418 = vst.msk [vmem:[%s659_s7] sm:$0xff] %vm417_vm14, %v482_v5 }

</bundles_post_ra>
